<compile_context>
chip_gen: v7x
topology: tpu7x:2x2x1
jax: 0.10.0
libtpu: 0.0.40
codegen_flags: <defaults>
</compile_context>

<pallas_src>
import functools

import jax
import jax.numpy as jnp
from jax.experimental import pallas as pl
from jax.experimental.pallas import tpu as pltpu


def _round_up(x, m):
    return ((x + m - 1) // m) * m


# --------------------------------------------------------------------------- #
# Kernel
# --------------------------------------------------------------------------- #
def vib_complete_kernel(
    # streamed per-batch inputs
    s_ref, pg_ref, goal_ref, eps_ref,
    # resident weights (constant index_map -> fetched once, live in VMEM)
    w_enc1_s_ref, w_enc1_pg_ref, b_enc1_ref, ln_g_ref, ln_b_ref,
    w_enc2_ref, b_enc2_ref,
    w_h1_ref, b_h1_ref, w_h2_ref, b_h2_ref,
    w_comb_a_ref, w_pg_ref, b_out_ref,
    # outputs
    out_ref, comp_ref,
    *, output_size, matmul_dtype,
):
    f32 = jnp.float32
    md = matmul_dtype
    O = output_size

    s = s_ref[...]                                     # [TB, S]
    pg = pg_ref[...]                                   # [TB, 2] pointgoal_with_gps
    goal = goal_ref[...]                               # [TB, 2] pointgoal
    eps = eps_ref[...]                                 # [TB, O] rsample noise
    pgx, pgy = pg[:, 0:1], pg[:, 1:2]
    goalx, goaly = goal[:, 0:1], goal[:, 1:2]

    # ---- priv_embed(mag_unit(pg_gps)) algebraically folded into encoder L1 --
    # One EUP rsqrt replaces sqrt + two divides; rho guarded for the (0,0) case.
    r2 = pgx * pgx + pgy * pgy
    inv = jax.lax.rsqrt(r2)
    rho = jnp.where(r2 > 0.0, r2 * inv, 0.0)
    ux, uy = pgx * inv, pgy * inv
    w_pg1 = w_enc1_pg_ref[...]                         # [3, 4O]  (= w_priv @ w_enc1_p)
    h = (jnp.dot(s.astype(md), w_enc1_s_ref[...].astype(md),
                 preferred_element_type=f32)
         + rho * w_pg1[0:1, :] + ux * w_pg1[1:2, :] + uy * w_pg1[2:3, :]
         + b_enc1_ref[...])                            # [TB, 4O]

    # ---- LayerNorm (two-pass, torch-exact) -> ReLU -> Linear(4O, 2O) --------
    mean = jnp.mean(h, axis=-1, keepdims=True)
    cen = h - mean
    var = jnp.mean(cen * cen, axis=-1, keepdims=True)
    h = cen * jax.lax.rsqrt(var + 1e-5) * ln_g_ref[...] + ln_b_ref[...]
    h = jnp.maximum(h, 0.0)
    # fused mu/sigma projection: single [4O, 2O] matmul, split in-register.
    ms = jnp.dot(h.astype(md), w_enc2_ref[...].astype(md),
                 preferred_element_type=f32) + b_enc2_ref[...]     # [TB, 2O]
    mu = ms[:, :O]
    sig = ms[:, O:]
    # softplus (torch semantics: beta=1, threshold=20)
    sig = jnp.where(sig > 20.0, sig,
                    jnp.log(1.0 + jnp.exp(jnp.minimum(sig, 20.0))))
    priv_emb = mu + sig * eps                          # Normal(mu, sig).rsample()

    # ---- fused gps_head / compass_head --------------------------------------
    # layer-1 weights column-concatenated -> one [S, S] matmul on s;
    # layer-2 block-diagonal -> one [S, 3] matmul -> [gps_x, gps_y, compass].
    h1 = jnp.maximum(
        jnp.dot(s.astype(md), w_h1_ref[...].astype(md),
                preferred_element_type=f32) + b_h1_ref[...], 0.0)  # [TB, S]
    heads = jnp.dot(h1.astype(md), w_h2_ref[...].astype(md),
                    preferred_element_type=f32) + b_h2_ref[...]    # [TB, 3]
    gps_x, gps_y, compass = heads[:, 0:1], heads[:, 1:2], heads[:, 2:3]

    # ---- pg = pointgoal - gps ; predicted_embed folded into combine_layer ---
    px = goalx - gps_x
    py = goaly - gps_y
    pr2 = px * px + py * py
    pinv = jax.lax.rsqrt(pr2)
    prho = jnp.where(pr2 > 0.0, pr2 * pinv, 0.0)
    w_pgc = w_pg_ref[...]                              # [3, O]  (= w_pe @ w_comb_b)
    out = (jnp.dot(priv_emb.astype(md), w_comb_a_ref[...].astype(md),
                   preferred_element_type=f32)
           + prho * w_pgc[0:1, :] + (px * pinv) * w_pgc[1:2, :]
           + (py * pinv) * w_pgc[2:3, :] + b_out_ref[...])
    out = jnp.maximum(out, 0.0)

    # two direct stores, no lane concat, no wrapper re-slicing
    out_ref[...] = out.astype(out_ref.dtype)
    comp_ref[...] = compass.astype(comp_ref.dtype)


# --------------------------------------------------------------------------- #
# Param packing (done ONCE, outside the per-call forward)
# --------------------------------------------------------------------------- #
_WEIGHT_NAMES = (
    "w_enc1_s", "w_enc1_pg", "b_enc1", "ln_g", "ln_b",
    "w_enc2", "b_enc2",
    "w_h1", "b_h1", "w_h2", "b_h2",
    "w_comb_a", "w_pg", "b_out",
)


def pack_params(p, state_size, output_size):
    """Fuse / pre-split weights once so no per-call HBM slicing is needed."""
    S, O = state_size, output_size
    S2 = S // 2
    w_enc1_p = p["w_enc1"][S:, :]                      # [32, 4O]
    w_comb_b = p["w_comb"][O:, :]                      # [O, O]
    # fused gps/compass head layer 1: [S, S]; layer 2 block-diagonal: [S, 3]
    w_h2 = jnp.zeros((S, 3), jnp.float32)
    w_h2 = w_h2.at[:S2, 0:2].set(p["w_gps2t"].T)
    w_h2 = w_h2.at[S2:, 2:3].set(p["w_cmp2t"].T)
    return dict(
        w_enc1_s=p["w_enc1"][:S, :],
        w_enc1_pg=p["w_priv"] @ w_enc1_p,              # priv_embed folded into enc L1
        b_enc1=p["b_priv"] @ w_enc1_p,
        ln_g=p["ln_g"], ln_b=p["ln_b"],
        w_enc2=p["w_enc2"], b_enc2=p["b_enc2"],        # fused mu/sigma projection
        w_h1=jnp.concatenate([p["w_gps1"], p["w_cmp1"]], axis=1),
        b_h1=jnp.concatenate([p["b_gps1"], p["b_cmp1"]], axis=1),
        w_h2=w_h2,
        b_h2=jnp.concatenate([p["b_gps2"], p["b_cmp2"]], axis=1),
        w_comb_a=p["w_comb"][:O, :],
        w_pg=p["w_pe"] @ w_comb_b,                     # predicted_embed folded
        b_out=p["b_comb"] + p["b_pe"] @ w_comb_b,
    )


# --------------------------------------------------------------------------- #
# Wrapper
# --------------------------------------------------------------------------- #
def vib_complete_forward(s, pg_gps, pointgoal, eps, packed, *,
                         block_b=4096, vmem_budget_bytes=40 << 20,
                         matmul_dtype=jnp.float32):
    B, S = s.shape
    O = eps.shape[-1]
    weights = [packed[n] for n in _WEIGHT_NAMES]

    # --- per-row VMEM footprint with 128-lane padding (f32) -----------------
    lane = lambda n: _round_up(n, 128)
    stream_row = 4 * (lane(S) + 2 * lane(2) + lane(O)       # s, pg, goal, eps
                      + lane(O) + lane(1))                  # out, compass
    interm_row = 4 * (2 * lane(4 * O) + 2 * lane(2 * O)     # h, ms (+temps)
                      + lane(S) + lane(O) + 2 * 128)        # h1, priv_emb, slack
    per_row = 2 * stream_row + interm_row                   # double-buffered streams
    wpad = sum(4 * _round_up(w.shape[0], 8) * lane(w.shape[1]) for w in weights)

    # --- tile selection ------------------------------------------------------
    block_b = max(8, (int(block_b) // 8) * 8)
    tb_budget = max(8, ((int(vmem_budget_bytes) // per_row) // 8) * 8)
    tb_split = max(8, _round_up(pl.cdiv(B, 2), 8))   # >=2 grid steps when B>8 (v7x)
    TB = max(8, min(block_b, tb_budget, tb_split))
    grid = (pl.cdiv(B, TB),)   # partial last tile handled by masked writeback

    in_specs = (
        [pl.BlockSpec((TB, S), lambda i: (i, 0)),
         pl.BlockSpec((TB, 2), lambda i: (i, 0)),
         pl.BlockSpec((TB, 2), lambda i: (i, 0)),
         pl.BlockSpec((TB, O), lambda i: (i, 0))]
        + [pl.BlockSpec(w.shape, lambda i: (0, 0)) for w in weights]
    )
    out_specs = [pl.BlockSpec((TB, O), lambda i: (i, 0)),
                 pl.BlockSpec((TB, 1), lambda i: (i, 0))]
    out_shape = (jax.ShapeDtypeStruct((B, O), jnp.float32),
                 jax.ShapeDtypeStruct((B, 1), jnp.float32))

    # --- advisory cost + VMEM limit from the padded footprint ---------------
    flops_per_row = 2 * (S * 4 * O + 3 * 4 * O + 4 * O * 2 * O
                         + S * S + S * 3 + O * O + 3 * O)
    wbytes = 4 * sum(int(w.size) for w in weights)
    bytes_accessed = int(4 * B * (S + 2 + 2 + O + O + 1) + wbytes)
    cost = pl.CostEstimate(flops=int(B * flops_per_row),
                           transcendentals=int(B * (O + 8)),
                           bytes_accessed=bytes_accessed)
    vmem_limit = int(per_row * TB + 2 * wpad + (12 << 20))

    kernel = functools.partial(vib_complete_kernel,
                               output_size=O, matmul_dtype=matmul_dtype)

    out, compass = pl.pallas_call(
        kernel,
        out_shape=out_shape,
        grid_spec=pltpu.PrefetchScalarGridSpec(
            num_scalar_prefetch=0,
            grid=grid,
            in_specs=in_specs,
            out_specs=out_specs,
        ),
        compiler_params=pltpu.CompilerParams(
            dimension_semantics=("parallel",),
            vmem_limit_bytes=vmem_limit,
        ),
        cost_estimate=cost,
    )(s, pg_gps, pointgoal, eps, *weights)

    return out, compass


# --------------------------------------------------------------------------- #
# Synthetic params + pure-JAX reference
# --------------------------------------------------------------------------- #
def init_params(key, state_size, output_size):
    """Deterministic synthetic params (weights stored as [in, out] unless noted)."""
    S, O = state_size, output_size
    S2 = S // 2
    shapes = {
        "w_priv": (3, 32), "b_priv": (1, 32),
        "w_enc1": (S + 32, 4 * O),
        "ln_g": (1, 4 * O), "ln_b": (1, 4 * O),
        "w_enc2": (4 * O, 2 * O), "b_enc2": (1, 2 * O),
        "w_gps1": (S, S2), "b_gps1": (1, S2),
        "w_gps2t": (2, S2), "b_gps2": (1, 2),      # stored [out, in] (transposed)
        "w_cmp1": (S, S2), "b_cmp1": (1, S2),
        "w_cmp2t": (1, S2), "b_cmp2": (1, 1),      # stored [out, in] (transposed)
        "w_pe": (3, O), "b_pe": (1, O),
        "w_comb": (2 * O, O), "b_comb": (1, O),
    }
    names = sorted(shapes)
    keys = jax.random.split(key, len(names))
    params = {n: 0.2 * jax.random.normal(k, shapes[n], jnp.float32)
              for n, k in zip(names, keys)}
    # torch LayerNorm default affine init
    params["ln_g"] = jnp.ones((1, 4 * O), jnp.float32)
    params["ln_b"] = jnp.zeros((1, 4 * O), jnp.float32)
    return params


def reference_forward(s, pg_gps, pointgoal, eps, p):
    """Pure-JAX reference mirroring the PyTorch forward (unfused weights)."""
    def mag_unit(xy):
        rho = jnp.sqrt(jnp.sum(xy * xy, axis=-1, keepdims=True))
        return jnp.concatenate([rho, xy / rho], axis=-1)

    priv = mag_unit(pg_gps) @ p["w_priv"] + p["b_priv"]
    h = jnp.concatenate([s, priv], -1) @ p["w_enc1"]
    mean = h.mean(-1, keepdims=True)
    var = ((h - mean) ** 2).mean(-1, keepdims=True)
    h = (h - mean) / jnp.sqrt(var + 1e-5) * p["ln_g"] + p["ln_b"]
    h = jnp.maximum(h, 0.0)
    ms = h @ p["w_enc2"] + p["b_enc2"]
    O = eps.shape[-1]
    mu, sig = ms[:, :O], jax.nn.softplus(ms[:, O:])
    priv_emb = mu + sig * eps
    g1 = jnp.maximum(s @ p["w_gps1"] + p["b_gps1"], 0.0)
    gps = g1 @ p["w_gps2t"].T + p["b_gps2"]
    c1 = jnp.maximum(s @ p["w_cmp1"] + p["b_cmp1"], 0.0)
    compass = c1 @ p["w_cmp2t"].T + p["b_cmp2"]
    pg = pointgoal - gps
    embed_pg = mag_unit(pg) @ p["w_pe"] + p["b_pe"]
    out = jnp.maximum(
        jnp.concatenate([priv_emb, embed_pg], -1) @ p["w_comb"] + p["b_comb"], 0.0)
    return out, compass


if __name__ == "__main__":
    B, S, O = 8, 32, 16    # batch, state_size, output_size
    key = jax.random.PRNGKey(0)
    k_s, k_pg, k_goal, k_eps, k_params = jax.random.split(key, 5)

    s = jax.random.normal(k_s, (B, S), jnp.float32)
    pointgoal_with_gps = jax.random.normal(k_pg, (B, 2), jnp.float32)
    pointgoal = jax.random.normal(k_goal, (B, 2), jnp.float32)
    eps = jax.random.normal(k_eps, (B, O), jnp.float32)   # noise for dist.rsample()
    params = init_params(k_params, S, O)
    packed = pack_params(params, S, O)                    # fuse/split weights once

    out, compass = jax.block_until_ready(
        vib_complete_forward(s, pointgoal_with_gps, pointgoal, eps, packed))

    out_ref, compass_ref = reference_forward(
        s, pointgoal_with_gps, pointgoal, eps, params)

    assert out.shape == (B, O) and compass.shape == (B, 1)
    assert jnp.allclose(out, out_ref, atol=2e-4, rtol=2e-4)
    assert jnp.allclose(compass, compass_ref, atol=2e-4, rtol=2e-4)
    print("KERNEL_OK")
</pallas_src>

<mosaic_0001>
module attributes {stable_mosaic.version = 11 : i64} {
  func.func @vib_complete_kernel(%arg0: i32, %arg1: memref<8x32xf32, #tpu.memory_space<vmem>>, %arg2: memref<8x2xf32, #tpu.memory_space<vmem>>, %arg3: memref<8x2xf32, #tpu.memory_space<vmem>>, %arg4: memref<8x16xf32, #tpu.memory_space<vmem>>, %arg5: memref<32x64xf32, #tpu.memory_space<vmem>>, %arg6: memref<3x64xf32, #tpu.memory_space<vmem>>, %arg7: memref<1x64xf32, #tpu.memory_space<vmem>>, %arg8: memref<1x64xf32, #tpu.memory_space<vmem>>, %arg9: memref<1x64xf32, #tpu.memory_space<vmem>>, %arg10: memref<64x32xf32, #tpu.memory_space<vmem>>, %arg11: memref<1x32xf32, #tpu.memory_space<vmem>>, %arg12: memref<32x32xf32, #tpu.memory_space<vmem>>, %arg13: memref<1x32xf32, #tpu.memory_space<vmem>>, %arg14: memref<32x3xf32, #tpu.memory_space<vmem>>, %arg15: memref<1x3xf32, #tpu.memory_space<vmem>>, %arg16: memref<16x16xf32, #tpu.memory_space<vmem>>, %arg17: memref<3x16xf32, #tpu.memory_space<vmem>>, %arg18: memref<1x16xf32, #tpu.memory_space<vmem>>, %arg19: memref<8x16xf32, #tpu.memory_space<vmem>>, %arg20: memref<8x1xf32, #tpu.memory_space<vmem>>) attributes {dimension_semantics = [#tpu.dimension_semantics<parallel>], iteration_bounds = array<i64: 1>, scalar_prefetch = 0 : i64, scratch_operands = 0 : i64, tpu.core_type = #tpu.core_type<tc>, window_params = [{transform_indices = @transform_0, window_bounds = array<i64: 8, 32>}, {transform_indices = @transform_1, window_bounds = array<i64: 8, 2>}, {transform_indices = @transform_2, window_bounds = array<i64: 8, 2>}, {transform_indices = @transform_3, window_bounds = array<i64: 8, 16>}, {pipeline_mode = #tpu.pipeline_mode<synchronous>, transform_indices = @transform_4, window_bounds = array<i64: 32, 64>}, {pipeline_mode = #tpu.pipeline_mode<synchronous>, transform_indices = @transform_5, window_bounds = array<i64: 3, 64>}, {pipeline_mode = #tpu.pipeline_mode<synchronous>, transform_indices = @transform_6, window_bounds = array<i64: 1, 64>}, {pipeline_mode = #tpu.pipeline_mode<synchronous>, transform_indices = @transform_7, window_bounds = array<i64: 1, 64>}, {pipeline_mode = #tpu.pipeline_mode<synchronous>, transform_indices = @transform_8, window_bounds = array<i64: 1, 64>}, {pipeline_mode = #tpu.pipeline_mode<synchronous>, transform_indices = @transform_9, window_bounds = array<i64: 64, 32>}, {pipeline_mode = #tpu.pipeline_mode<synchronous>, transform_indices = @transform_10, window_bounds = array<i64: 1, 32>}, {pipeline_mode = #tpu.pipeline_mode<synchronous>, transform_indices = @transform_11, window_bounds = array<i64: 32, 32>}, {pipeline_mode = #tpu.pipeline_mode<synchronous>, transform_indices = @transform_12, window_bounds = array<i64: 1, 32>}, {pipeline_mode = #tpu.pipeline_mode<synchronous>, transform_indices = @transform_13, window_bounds = array<i64: 32, 3>}, {pipeline_mode = #tpu.pipeline_mode<synchronous>, transform_indices = @transform_14, window_bounds = array<i64: 1, 3>}, {pipeline_mode = #tpu.pipeline_mode<synchronous>, transform_indices = @transform_15, window_bounds = array<i64: 16, 16>}, {pipeline_mode = #tpu.pipeline_mode<synchronous>, transform_indices = @transform_16, window_bounds = array<i64: 3, 16>}, {pipeline_mode = #tpu.pipeline_mode<synchronous>, transform_indices = @transform_17, window_bounds = array<i64: 1, 16>}, {transform_indices = @transform_18, window_bounds = array<i64: 8, 16>}, {transform_indices = @transform_19, window_bounds = array<i64: 8, 1>}]} {
    %c0 = arith.constant 0 : index
    %c0_0 = arith.constant 0 : index
    %0 = vector.load %arg1[%c0, %c0_0] : memref<8x32xf32, #tpu.memory_space<vmem>>, vector<8x32xf32>
    %c0_1 = arith.constant 0 : index
    %c0_2 = arith.constant 0 : index
    %1 = vector.load %arg2[%c0_1, %c0_2] : memref<8x2xf32, #tpu.memory_space<vmem>>, vector<8x2xf32>
    %c0_3 = arith.constant 0 : index
    %c0_4 = arith.constant 0 : index
    %2 = vector.load %arg3[%c0_3, %c0_4] : memref<8x2xf32, #tpu.memory_space<vmem>>, vector<8x2xf32>
    %c0_5 = arith.constant 0 : index
    %c0_6 = arith.constant 0 : index
    %3 = vector.load %arg4[%c0_5, %c0_6] : memref<8x16xf32, #tpu.memory_space<vmem>>, vector<8x16xf32>
    %4 = vector.extract_strided_slice %1 {offsets = [0, 0], sizes = [8, 1], strides = [1, 1]} : vector<8x2xf32> to vector<8x1xf32>
    %5 = vector.extract_strided_slice %1 {offsets = [0, 1], sizes = [8, 1], strides = [1, 1]} : vector<8x2xf32> to vector<8x1xf32>
    %6 = vector.extract_strided_slice %2 {offsets = [0, 0], sizes = [8, 1], strides = [1, 1]} : vector<8x2xf32> to vector<8x1xf32>
    %7 = vector.extract_strided_slice %2 {offsets = [0, 1], sizes = [8, 1], strides = [1, 1]} : vector<8x2xf32> to vector<8x1xf32>
    %8 = arith.mulf %4, %4 : vector<8x1xf32>
    %9 = arith.mulf %5, %5 : vector<8x1xf32>
    %10 = arith.addf %8, %9 : vector<8x1xf32>
    %11 = math.rsqrt %10 : vector<8x1xf32>
    %cst = arith.constant 0.000000e+00 : f32
    %12 = vector.broadcast %cst : f32 to vector<8x1xf32>
    %13 = arith.cmpf ogt, %10, %12 : vector<8x1xf32>
    %14 = arith.mulf %10, %11 : vector<8x1xf32>
    %cst_7 = arith.constant 0.000000e+00 : f32
    %15 = vector.broadcast %cst_7 : f32 to vector<8x1xf32>
    %16 = arith.select %13, %14, %15 : vector<8x1xi1>, vector<8x1xf32>
    %17 = arith.mulf %4, %11 : vector<8x1xf32>
    %18 = arith.mulf %5, %11 : vector<8x1xf32>
    %c0_8 = arith.constant 0 : index
    %c0_9 = arith.constant 0 : index
    %19 = vector.load %arg6[%c0_8, %c0_9] : memref<3x64xf32, #tpu.memory_space<vmem>>, vector<3x64xf32>
    %c0_10 = arith.constant 0 : index
    %c0_11 = arith.constant 0 : index
    %20 = vector.load %arg5[%c0_10, %c0_11] : memref<32x64xf32, #tpu.memory_space<vmem>>, vector<32x64xf32>
    %cst_12 = arith.constant dense<0.000000e+00> : vector<8x64xf32>
    %21 = tpu.matmul %0, %20, %cst_12 {dimension_numbers = #tpu.dot_dimension_numbers<[1], [0], [0], [1], [0, 0, 1, 1], [], []>} : vector<8x32xf32>, vector<32x64xf32>, vector<8x64xf32> -> vector<8x64xf32>
    %22 = vector.extract_strided_slice %19 {offsets = [0, 0], sizes = [1, 64], strides = [1, 1]} : vector<3x64xf32> to vector<1x64xf32>
    %23 = vector.broadcast %16 : vector<8x1xf32> to vector<8x64xf32>
    %24 = vector.broadcast %22 : vector<1x64xf32> to vector<8x64xf32>
    %25 = arith.mulf %23, %24 : vector<8x64xf32>
    %26 = arith.addf %21, %25 : vector<8x64xf32>
    %27 = vector.extract_strided_slice %19 {offsets = [1, 0], sizes = [1, 64], strides = [1, 1]} : vector<3x64xf32> to vector<1x64xf32>
    %28 = vector.broadcast %17 : vector<8x1xf32> to vector<8x64xf32>
    %29 = vector.broadcast %27 : vector<1x64xf32> to vector<8x64xf32>
    %30 = arith.mulf %28, %29 : vector<8x64xf32>
    %31 = arith.addf %26, %30 : vector<8x64xf32>
    %32 = vector.extract_strided_slice %19 {offsets = [2, 0], sizes = [1, 64], strides = [1, 1]} : vector<3x64xf32> to vector<1x64xf32>
    %33 = vector.broadcast %18 : vector<8x1xf32> to vector<8x64xf32>
    %34 = vector.broadcast %32 : vector<1x64xf32> to vector<8x64xf32>
    %35 = arith.mulf %33, %34 : vector<8x64xf32>
    %36 = arith.addf %31, %35 : vector<8x64xf32>
    %c0_13 = arith.constant 0 : index
    %c0_14 = arith.constant 0 : index
    %37 = vector.load %arg7[%c0_13, %c0_14] : memref<1x64xf32, #tpu.memory_space<vmem>>, vector<1x64xf32>
    %38 = vector.broadcast %37 : vector<1x64xf32> to vector<8x64xf32>
    %39 = arith.addf %36, %38 : vector<8x64xf32>
    %cst_15 = arith.constant dense<0.000000e+00> : vector<8xf32>
    %40 = vector.multi_reduction <add>, %39, %cst_15 [1] : vector<8x64xf32> to vector<8xf32>
    %41 = vector.shape_cast %40 : vector<8xf32> to vector<8x1xf32>
    %cst_16 = arith.constant 6.400000e+01 : f32
    %42 = vector.broadcast %cst_16 : f32 to vector<8x1xf32>
    %43 = arith.divf %41, %42 : vector<8x1xf32>
    %44 = vector.broadcast %43 : vector<8x1xf32> to vector<8x64xf32>
    %45 = arith.subf %39, %44 : vector<8x64xf32>
    %46 = arith.mulf %45, %45 : vector<8x64xf32>
    %cst_17 = arith.constant dense<0.000000e+00> : vector<8xf32>
    %47 = vector.multi_reduction <add>, %46, %cst_17 [1] : vector<8x64xf32> to vector<8xf32>
    %48 = vector.shape_cast %47 : vector<8xf32> to vector<8x1xf32>
    %cst_18 = arith.constant 6.400000e+01 : f32
    %49 = vector.broadcast %cst_18 : f32 to vector<8x1xf32>
    %50 = arith.divf %48, %49 : vector<8x1xf32>
    %cst_19 = arith.constant 9.99999974E-6 : f32
    %51 = vector.broadcast %cst_19 : f32 to vector<8x1xf32>
    %52 = arith.addf %50, %51 : vector<8x1xf32>
    %53 = math.rsqrt %52 : vector<8x1xf32>
    %54 = vector.broadcast %53 : vector<8x1xf32> to vector<8x64xf32>
    %55 = arith.mulf %45, %54 : vector<8x64xf32>
    %c0_20 = arith.constant 0 : index
    %c0_21 = arith.constant 0 : index
    %56 = vector.load %arg8[%c0_20, %c0_21] : memref<1x64xf32, #tpu.memory_space<vmem>>, vector<1x64xf32>
    %57 = vector.broadcast %56 : vector<1x64xf32> to vector<8x64xf32>
    %58 = arith.mulf %55, %57 : vector<8x64xf32>
    %c0_22 = arith.constant 0 : index
    %c0_23 = arith.constant 0 : index
    %59 = vector.load %arg9[%c0_22, %c0_23] : memref<1x64xf32, #tpu.memory_space<vmem>>, vector<1x64xf32>
    %60 = vector.broadcast %59 : vector<1x64xf32> to vector<8x64xf32>
    %61 = arith.addf %58, %60 : vector<8x64xf32>
    %cst_24 = arith.constant 0.000000e+00 : f32
    %62 = vector.broadcast %cst_24 : f32 to vector<8x64xf32>
    %63 = arith.maximumf %61, %62 : vector<8x64xf32>
    %c0_25 = arith.constant 0 : index
    %c0_26 = arith.constant 0 : index
    %64 = vector.load %arg10[%c0_25, %c0_26] : memref<64x32xf32, #tpu.memory_space<vmem>>, vector<64x32xf32>
    %cst_27 = arith.constant dense<0.000000e+00> : vector<8x32xf32>
    %65 = tpu.matmul %63, %64, %cst_27 {dimension_numbers = #tpu.dot_dimension_numbers<[1], [0], [0], [1], [0, 0, 1, 1], [], []>} : vector<8x64xf32>, vector<64x32xf32>, vector<8x32xf32> -> vector<8x32xf32>
    %c0_28 = arith.constant 0 : index
    %c0_29 = arith.constant 0 : index
    %66 = vector.load %arg11[%c0_28, %c0_29] : memref<1x32xf32, #tpu.memory_space<vmem>>, vector<1x32xf32>
    %67 = vector.broadcast %66 : vector<1x32xf32> to vector<8x32xf32>
    %68 = arith.addf %65, %67 : vector<8x32xf32>
    %69 = vector.extract_strided_slice %68 {offsets = [0, 0], sizes = [8, 16], strides = [1, 1]} : vector<8x32xf32> to vector<8x16xf32>
    %70 = vector.extract_strided_slice %68 {offsets = [0, 16], sizes = [8, 16], strides = [1, 1]} : vector<8x32xf32> to vector<8x16xf32>
    %cst_30 = arith.constant 2.000000e+01 : f32
    %71 = vector.broadcast %cst_30 : f32 to vector<8x16xf32>
    %72 = arith.cmpf ogt, %70, %71 : vector<8x16xf32>
    %cst_31 = arith.constant 2.000000e+01 : f32
    %73 = vector.broadcast %cst_31 : f32 to vector<8x16xf32>
    %74 = arith.minimumf %70, %73 : vector<8x16xf32>
    %75 = math.exp %74 : vector<8x16xf32>
    %cst_32 = arith.constant 1.000000e+00 : f32
    %76 = vector.broadcast %cst_32 : f32 to vector<8x16xf32>
    %77 = arith.addf %76, %75 : vector<8x16xf32>
    %78 = math.log %77 : vector<8x16xf32>
    %79 = arith.select %72, %70, %78 : vector<8x16xi1>, vector<8x16xf32>
    %80 = arith.mulf %79, %3 : vector<8x16xf32>
    %81 = arith.addf %69, %80 : vector<8x16xf32>
    %c0_33 = arith.constant 0 : index
    %c0_34 = arith.constant 0 : index
    %82 = vector.load %arg12[%c0_33, %c0_34] : memref<32x32xf32, #tpu.memory_space<vmem>>, vector<32x32xf32>
    %cst_35 = arith.constant dense<0.000000e+00> : vector<8x32xf32>
    %83 = tpu.matmul %0, %82, %cst_35 {dimension_numbers = #tpu.dot_dimension_numbers<[1], [0], [0], [1], [0, 0, 1, 1], [], []>} : vector<8x32xf32>, vector<32x32xf32>, vector<8x32xf32> -> vector<8x32xf32>
    %c0_36 = arith.constant 0 : index
    %c0_37 = arith.constant 0 : index
    %84 = vector.load %arg13[%c0_36, %c0_37] : memref<1x32xf32, #tpu.memory_space<vmem>>, vector<1x32xf32>
    %85 = vector.broadcast %84 : vector<1x32xf32> to vector<8x32xf32>
    %86 = arith.addf %83, %85 : vector<8x32xf32>
    %cst_38 = arith.constant 0.000000e+00 : f32
    %87 = vector.broadcast %cst_38 : f32 to vector<8x32xf32>
    %88 = arith.maximumf %86, %87 : vector<8x32xf32>
    %c0_39 = arith.constant 0 : index
    %c0_40 = arith.constant 0 : index
    %89 = vector.load %arg14[%c0_39, %c0_40] : memref<32x3xf32, #tpu.memory_space<vmem>>, vector<32x3xf32>
    %cst_41 = arith.constant dense<0.000000e+00> : vector<8x3xf32>
    %90 = tpu.matmul %88, %89, %cst_41 {dimension_numbers = #tpu.dot_dimension_numbers<[1], [0], [0], [1], [0, 0, 1, 1], [], []>} : vector<8x32xf32>, vector<32x3xf32>, vector<8x3xf32> -> vector<8x3xf32>
    %c0_42 = arith.constant 0 : index
    %c0_43 = arith.constant 0 : index
    %91 = vector.load %arg15[%c0_42, %c0_43] : memref<1x3xf32, #tpu.memory_space<vmem>>, vector<1x3xf32>
    %92 = vector.broadcast %91 : vector<1x3xf32> to vector<8x3xf32>
    %93 = arith.addf %90, %92 : vector<8x3xf32>
    %94 = vector.extract_strided_slice %93 {offsets = [0, 0], sizes = [8, 1], strides = [1, 1]} : vector<8x3xf32> to vector<8x1xf32>
    %95 = vector.extract_strided_slice %93 {offsets = [0, 1], sizes = [8, 1], strides = [1, 1]} : vector<8x3xf32> to vector<8x1xf32>
    %96 = vector.extract_strided_slice %93 {offsets = [0, 2], sizes = [8, 1], strides = [1, 1]} : vector<8x3xf32> to vector<8x1xf32>
    %97 = arith.subf %6, %94 : vector<8x1xf32>
    %98 = arith.subf %7, %95 : vector<8x1xf32>
    %99 = arith.mulf %97, %97 : vector<8x1xf32>
    %100 = arith.mulf %98, %98 : vector<8x1xf32>
    %101 = arith.addf %99, %100 : vector<8x1xf32>
    %102 = math.rsqrt %101 : vector<8x1xf32>
    %cst_44 = arith.constant 0.000000e+00 : f32
    %103 = vector.broadcast %cst_44 : f32 to vector<8x1xf32>
    %104 = arith.cmpf ogt, %101, %103 : vector<8x1xf32>
    %105 = arith.mulf %101, %102 : vector<8x1xf32>
    %cst_45 = arith.constant 0.000000e+00 : f32
    %106 = vector.broadcast %cst_45 : f32 to vector<8x1xf32>
    %107 = arith.select %104, %105, %106 : vector<8x1xi1>, vector<8x1xf32>
    %c0_46 = arith.constant 0 : index
    %c0_47 = arith.constant 0 : index
    %108 = vector.load %arg17[%c0_46, %c0_47] : memref<3x16xf32, #tpu.memory_space<vmem>>, vector<3x16xf32>
    %c0_48 = arith.constant 0 : index
    %c0_49 = arith.constant 0 : index
    %109 = vector.load %arg16[%c0_48, %c0_49] : memref<16x16xf32, #tpu.memory_space<vmem>>, vector<16x16xf32>
    %cst_50 = arith.constant dense<0.000000e+00> : vector<8x16xf32>
    %110 = tpu.matmul %81, %109, %cst_50 {dimension_numbers = #tpu.dot_dimension_numbers<[1], [0], [0], [1], [0, 0, 1, 1], [], []>} : vector<8x16xf32>, vector<16x16xf32>, vector<8x16xf32> -> vector<8x16xf32>
    %111 = vector.extract_strided_slice %108 {offsets = [0, 0], sizes = [1, 16], strides = [1, 1]} : vector<3x16xf32> to vector<1x16xf32>
    %112 = vector.broadcast %107 : vector<8x1xf32> to vector<8x16xf32>
    %113 = vector.broadcast %111 : vector<1x16xf32> to vector<8x16xf32>
    %114 = arith.mulf %112, %113 : vector<8x16xf32>
    %115 = arith.addf %110, %114 : vector<8x16xf32>
    %116 = arith.mulf %97, %102 : vector<8x1xf32>
    %117 = vector.extract_strided_slice %108 {offsets = [1, 0], sizes = [1, 16], strides = [1, 1]} : vector<3x16xf32> to vector<1x16xf32>
    %118 = vector.broadcast %116 : vector<8x1xf32> to vector<8x16xf32>
    %119 = vector.broadcast %117 : vector<1x16xf32> to vector<8x16xf32>
    %120 = arith.mulf %118, %119 : vector<8x16xf32>
    %121 = arith.addf %115, %120 : vector<8x16xf32>
    %122 = arith.mulf %98, %102 : vector<8x1xf32>
    %123 = vector.extract_strided_slice %108 {offsets = [2, 0], sizes = [1, 16], strides = [1, 1]} : vector<3x16xf32> to vector<1x16xf32>
    %124 = vector.broadcast %122 : vector<8x1xf32> to vector<8x16xf32>
    %125 = vector.broadcast %123 : vector<1x16xf32> to vector<8x16xf32>
    %126 = arith.mulf %124, %125 : vector<8x16xf32>
    %127 = arith.addf %121, %126 : vector<8x16xf32>
    %c0_51 = arith.constant 0 : index
    %c0_52 = arith.constant 0 : index
    %128 = vector.load %arg18[%c0_51, %c0_52] : memref<1x16xf32, #tpu.memory_space<vmem>>, vector<1x16xf32>
    %129 = vector.broadcast %128 : vector<1x16xf32> to vector<8x16xf32>
    %130 = arith.addf %127, %129 : vector<8x16xf32>
    %cst_53 = arith.constant 0.000000e+00 : f32
    %131 = vector.broadcast %cst_53 : f32 to vector<8x16xf32>
    %132 = arith.maximumf %130, %131 : vector<8x16xf32>
    %c0_54 = arith.constant 0 : index
    %c0_55 = arith.constant 0 : index
    %133 = vector.load %arg19[%c0_54, %c0_55] : memref<8x16xf32, #tpu.memory_space<vmem>>, vector<8x16xf32>
    tpu.vector_store %arg19[%c0_54, %c0_55], %132 {strides = array<i32>} : memref<8x16xf32, #tpu.memory_space<vmem>>, vector<8x16xf32>,
    %c0_56 = arith.constant 0 : index
    %c0_57 = arith.constant 0 : index
    %134 = vector.load %arg20[%c0_56, %c0_57] : memref<8x1xf32, #tpu.memory_space<vmem>>, vector<8x1xf32>
    tpu.vector_store %arg20[%c0_56, %c0_57], %96 {strides = array<i32>} : memref<8x1xf32, #tpu.memory_space<vmem>>, vector<8x1xf32>,
    return
  }
  func.func @transform_0(%arg0: i32) -> (i32, i32) {
    %c0_i32 = arith.constant 0 : i32
    %c0_i32_0 = arith.constant 0 : i32
    return %arg0, %c0_i32 : i32, i32
  }
  func.func @transform_1(%arg0: i32) -> (i32, i32) {
    %c0_i32 = arith.constant 0 : i32
    %c0_i32_0 = arith.constant 0 : i32
    return %arg0, %c0_i32 : i32, i32
  }
  func.func @transform_2(%arg0: i32) -> (i32, i32) {
    %c0_i32 = arith.constant 0 : i32
    %c0_i32_0 = arith.constant 0 : i32
    return %arg0, %c0_i32 : i32, i32
  }
  func.func @transform_3(%arg0: i32) -> (i32, i32) {
    %c0_i32 = arith.constant 0 : i32
    %c0_i32_0 = arith.constant 0 : i32
    return %arg0, %c0_i32 : i32, i32
  }
  func.func @transform_4(%arg0: i32) -> (i32, i32) {
    %c0_i32 = arith.constant 0 : i32
    %c0_i32_0 = arith.constant 0 : i32
    %c0_i32_1 = arith.constant 0 : i32
    return %c0_i32, %c0_i32_0 : i32, i32
  }
  func.func @transform_5(%arg0: i32) -> (i32, i32) {
    %c0_i32 = arith.constant 0 : i32
    %c0_i32_0 = arith.constant 0 : i32
    %c0_i32_1 = arith.constant 0 : i32
    return %c0_i32, %c0_i32_0 : i32, i32
  }
  func.func @transform_6(%arg0: i32) -> (i32, i32) {
    %c0_i32 = arith.constant 0 : i32
    %c0_i32_0 = arith.constant 0 : i32
    %c0_i32_1 = arith.constant 0 : i32
    return %c0_i32, %c0_i32_0 : i32, i32
  }
  func.func @transform_7(%arg0: i32) -> (i32, i32) {
    %c0_i32 = arith.constant 0 : i32
    %c0_i32_0 = arith.constant 0 : i32
    %c0_i32_1 = arith.constant 0 : i32
    return %c0_i32, %c0_i32_0 : i32, i32
  }
  func.func @transform_8(%arg0: i32) -> (i32, i32) {
    %c0_i32 = arith.constant 0 : i32
    %c0_i32_0 = arith.constant 0 : i32
    %c0_i32_1 = arith.constant 0 : i32
    return %c0_i32, %c0_i32_0 : i32, i32
  }
  func.func @transform_9(%arg0: i32) -> (i32, i32) {
    %c0_i32 = arith.constant 0 : i32
    %c0_i32_0 = arith.constant 0 : i32
    %c0_i32_1 = arith.constant 0 : i32
    return %c0_i32, %c0_i32_0 : i32, i32
  }
  func.func @transform_10(%arg0: i32) -> (i32, i32) {
    %c0_i32 = arith.constant 0 : i32
    %c0_i32_0 = arith.constant 0 : i32
    %c0_i32_1 = arith.constant 0 : i32
    return %c0_i32, %c0_i32_0 : i32, i32
  }
  func.func @transform_11(%arg0: i32) -> (i32, i32) {
    %c0_i32 = arith.constant 0 : i32
    %c0_i32_0 = arith.constant 0 : i32
    %c0_i32_1 = arith.constant 0 : i32
    return %c0_i32, %c0_i32_0 : i32, i32
  }
  func.func @transform_12(%arg0: i32) -> (i32, i32) {
    %c0_i32 = arith.constant 0 : i32
    %c0_i32_0 = arith.constant 0 : i32
    %c0_i32_1 = arith.constant 0 : i32
    return %c0_i32, %c0_i32_0 : i32, i32
  }
  func.func @transform_13(%arg0: i32) -> (i32, i32) {
    %c0_i32 = arith.constant 0 : i32
    %c0_i32_0 = arith.constant 0 : i32
    %c0_i32_1 = arith.constant 0 : i32
    return %c0_i32, %c0_i32_0 : i32, i32
  }
  func.func @transform_14(%arg0: i32) -> (i32, i32) {
    %c0_i32 = arith.constant 0 : i32
    %c0_i32_0 = arith.constant 0 : i32
    %c0_i32_1 = arith.constant 0 : i32
    return %c0_i32, %c0_i32_0 : i32, i32
  }
  func.func @transform_15(%arg0: i32) -> (i32, i32) {
    %c0_i32 = arith.constant 0 : i32
    %c0_i32_0 = arith.constant 0 : i32
    %c0_i32_1 = arith.constant 0 : i32
    return %c0_i32, %c0_i32_0 : i32, i32
  }
  func.func @transform_16(%arg0: i32) -> (i32, i32) {
    %c0_i32 = arith.constant 0 : i32
    %c0_i32_0 = arith.constant 0 : i32
    %c0_i32_1 = arith.constant 0 : i32
    return %c0_i32, %c0_i32_0 : i32, i32
  }
  func.func @transform_17(%arg0: i32) -> (i32, i32) {
    %c0_i32 = arith.constant 0 : i32
    %c0_i32_0 = arith.constant 0 : i32
    %c0_i32_1 = arith.constant 0 : i32
    return %c0_i32, %c0_i32_0 : i32, i32
  }
  func.func @transform_18(%arg0: i32) -> (i32, i32) {
    %c0_i32 = arith.constant 0 : i32
    %c0_i32_0 = arith.constant 0 : i32
    return %arg0, %c0_i32 : i32, i32
  }
  func.func @transform_19(%arg0: i32) -> (i32, i32) {
    %c0_i32 = arith.constant 0 : i32
    %c0_i32_0 = arith.constant 0 : i32
    return %arg0, %c0_i32 : i32, i32
  }
}

</mosaic_0001>

<bundles_post_ra>
// kernel: tpu_custom_call.1
= control target key start
LH: loop header
LB: loop body
LE: loop exit
PB: predicated region body
PF: predicated region fallthrough
CT: control target
= control target key end

     0   :  { %s1140_s0 = inlined_call_operand.vmem [shape: f32[8,32], index: 0, kind: input, shape index: {}]   ;;  %s1141_s1 = inlined_call_operand.vmem [shape: f32[8,2], index: 1, kind: input, shape index: {}]   ;;  %s1142_s2 = inlined_call_operand.vmem [shape: f32[8,2], index: 2, kind: input, shape index: {}]   ;;  %s1143_s3 = inlined_call_operand.vmem [shape: f32[8,16], index: 3, kind: input, shape index: {}]   ;;  %s1144_s4 = inlined_call_operand.vmem [shape: f32[32,64], index: 4, kind: input, shape index: {}]   ;;  %s1145_s5 = inlined_call_operand.vmem [shape: f32[3,64], index: 5, kind: input, shape index: {}]   ;;  %s1146_s6 = inlined_call_operand.vmem [shape: f32[1,64], index: 6, kind: input, shape index: {}]   ;;  %s1147_s7 = inlined_call_operand.vmem [shape: f32[1,64], index: 7, kind: input, shape index: {}]   ;;  %s1148_s8 = inlined_call_operand.vmem [shape: f32[1,64], index: 8, kind: input, shape index: {}]   ;;  %s1149_s9 = inlined_call_operand.vmem [shape: f32[64,32], index: 9, kind: input, shape index: {}]   ;;  %s1150_s10 = inlined_call_operand.vmem [shape: f32[1,32], index: 10, kind: input, shape index: {}]   ;;  %s1151_s11 = inlined_call_operand.vmem [shape: f32[32,32], index: 11, kind: input, shape index: {}]   ;;  %s1152_s12 = inlined_call_operand.vmem [shape: f32[1,32], index: 12, kind: input, shape index: {}]   ;;  %s1153_s13 = inlined_call_operand.vmem [shape: f32[32,3], index: 13, kind: input, shape index: {}]   ;;  %s1154_s14 = inlined_call_operand.vmem [shape: f32[1,3], index: 14, kind: input, shape index: {}]   ;;  %s1155_s15 = inlined_call_operand.vmem [shape: f32[16,16], index: 15, kind: input, shape index: {}]   ;;  %s1156_s16 = inlined_call_operand.vmem [shape: f32[3,16], index: 16, kind: input, shape index: {}]   ;;  %s1157_s17 = inlined_call_operand.vmem [shape: f32[1,16], index: 17, kind: input, shape index: {}]   ;;  %s1158_s18 = inlined_call_operand.hbm [shape: f32[8,16], index: 18, kind: output, shape index: {0}]   ;;  %s1159_s19 = inlined_call_operand.vmem [shape: f32[8,1], index: 19, kind: output, shape index: {1}]  }
   0x1   :  { %1160 = sst [smem:[#allocation5_spill]] %s1140_s0 }
   0x2   :  { %1161 = sst [smem:[#allocation6_spill]] %s1141_s1 }
   0x3   :  { %1162 = sst [smem:[#allocation7_spill]] %s1142_s2 }
   0x4   :  { %1163 = sst [smem:[#allocation8_spill]] %s1143_s3 }
   0x5   :  { %v83_v0 = vld [vmem:[%s1144_s4] sm:$0xff]  ;;  %v84_v1 = vld [vmem:[%s1144_s4 + $0x8] sm:$0xff]  ;;  %s1164_s2 = sld [smem:[#allocation6_spill]]  ;;  %v846_v3 = vmov 0.0|0.0   ;;  %v85_v6 = vld [vmem:[%s1144_s4 + $0x10] sm:$0xff]  ;;  %vm847_vm0 = vmmov 0  }
   0x6   :  { %763 = vmatprep.subr.bf16.mxu0 %v846_v3  ;;  %v764_v4 = vpack.c.bf16 %v84_v1, %v83_v0  ;;  %v86_v7 = vld [vmem:[%s1144_s4 + $0x18] sm:$0xff]  ;;  %769 = vmatprep.subr.bf16.mxu1 %v846_v3  ;;  %v848_v8 = vmov 0.0   ;;  %s849_s26 = smov 127  }
   0x7   :  { %712 = vmatprep.mubr.msk.f32.mxu0 %vm847_vm0, %v848_v8  ;;  %731 = vmatprep.mubr.msk.f32.mxu1 %vm847_vm0, %v848_v8  ;;  %v767_v9 = vpack.c.bf16 %v86_v7, %v85_v6 }
   0x8   :  { %765 = vmatpush3.bf16.msra.mxu0 %v764_v4 }
   0xb   :  { %v966_v2 = vld [vmem:[%s1164_s2] sm:$0xff] }
   0xc   :  { %v66_v5 = vmul.f32 %v966_v2, %v966_v2 }
   0xe   :  { %68 = vrot.lane.b32.xlu0 %v66_v5, %s849_s26 }
   0xf   :  { %25 = vsyncpa [#allocation3], 0  ;;  %766 = vmatprep.subr.bf16.mxu0 %v846_v3  ;;  %v339_v10 = vld [vmem:[%s1151_s11] sm:$0xff]  ;;  %v340_v11 = vld [vmem:[%s1151_s11 + $0x8] sm:$0xff]  ;;  %v850_v12 = vmov 0   ;;  %s1165_s20 = sld [smem:[#allocation5_spill]]  ;;  %v92_v40 = vlaneseq }
  0x10   :  { %807 = vset.pattern.permute.xlu1 %v850_v12  ;;  %768 = vmatpush3.bf16.msra.mxu0 %v767_v9  ;;  %vm97_vm1 = vcmask 261120   ;;  %v782_v14 = vpack.c.bf16 %v340_v11, %v339_v10  ;;  %v341_v15 = vld [vmem:[%s1151_s11 + $0x10] sm:$0xff]  ;;  %v342_v16 = vld [vmem:[%s1151_s11 + $0x18] sm:$0xff]  ;;  %v421_v18 = vld [vmem:[%s1153_s13] sm:$0xff]  ;;  %v851_v26 = vmov 1   ;;  %s852_s29 = smov 1  }
  0x11   :  { %781 = vmatprep.subr.bf16.mxu0 %v846_v3  ;;  %v785_v17 = vpack.c.bf16 %v342_v16, %v341_v15  ;;  %v422_v19 = vld [vmem:[%s1153_s13 + $0x8] sm:$0xff]  ;;  %v423_v21 = vld [vmem:[%s1153_s13 + $0x10] sm:$0xff]  ;;  %v424_v22 = vld [vmem:[%s1153_s13 + $0x18] sm:$0xff]  ;;  %808 = vset.pattern.permute.xlu0 %v851_v26  ;;  %v1029_v41 = vshrl.u32 %v92_v40, 7  ;;  %vm201_vm3 = vcmask 523264   ;;  %s1166_s22 = sld [smem:[#allocation8_spill]] }
  0x12   :  { %v788_v20 = vpack.c.bf16 %v422_v19, %v421_v18  ;;  %v791_v23 = vpack.c.bf16 %v424_v22, %v423_v21  ;;  %v671_v33 = vld [vmem:[%s1152_s12] ss:$0 sm:$0xff]  ;;  %s853_s2 = smov 16   ;;  %s1167_s3 = sld [smem:[#allocation7_spill]]  ;;  %v236_v16 = vld [vmem:[%s1149_s9 + $0x18] sm:$0xff]  ;;  %v238_v19 = vld [vmem:[%s1149_s9 + $0x28] sm:$0xff] }
  0x13   :  { %v94_v42 = vsub.s32 0, %v1029_v41  ;;  %v82_v43 = vld [vmem:[%s1145_s5] sm:$0x7]  ;;  %v178_v45 = vsub.s32 1, %v1029_v41  ;;  %v189_v48 = vsub.s32 2, %v1029_v41  ;;  %v239_v21 = vld [vmem:[%s1149_s9 + $0x30] sm:$0xff] }
  0x14   :  { %v666_v57 = vld [vmem:[%s1146_s6] ss:$0 sm:$0xff]  ;;  %v240_v22 = vld [vmem:[%s1149_s9 + $0x38] sm:$0xff]  ;;  %vm529_vm6 = vcmask 130048   ;;  %vm645_vm7 = vcmask 7168   ;;  %s856_s13 = smov [#allocation2]  }
  0x15   :  { %v62_v13 = vld [vmem:[%s1165_s20] sm:$0xff]  ;;  %v95_v46 = vrot.slane %v82_v43, %v94_v42  ;;  %v179_v47 = vrot.slane %v82_v43, %v178_v45  ;;  %v190_v52 = vrot.slane %v82_v43, %v189_v48 }
  0x16   :  { %713 = vmatmul.mubr.msk.f32.vlgmr.msra.gmra.mrb[0].mxu0 %vm97_vm1, %v62_v13  ;;  %v673_v62 = vld [vmem:[%s1154_s14] ss:$0 sm:$0xff] }
  0x17   :  { %783 = vmatpush3.bf16.msra.mxu0 %v782_v14  ;;  %742 = vmatprep.mubr.msk.f32.mxu0 %vm847_vm0, %v848_v8  ;;  %v65_v61 = vld [vmem:[%s1166_s22] sm:$0xff]  ;;  %v235_v14 = vld [vmem:[%s1149_s9 + $0x10] sm:$0xff] }
  0x18   :  { %784 = vmatprep.subr.bf16.mxu0 %v846_v3  ;;  %v64_v63 = vld [vmem:[%s1167_s3] sm:$0xff] }
  0x19   :  { %v237_v18 = vld [vmem:[%s1149_s9 + $0x20] sm:$0xff] }
  0x1a   :  { %v517_v43 = vld [vmem:[%s1155_s15] sm:$0xff] }
  0x1b   :  { %786 = vmatpush3.bf16.msra.mxu0 %v785_v17  ;;  %v773_v17 = vpack.c.bf16 %v236_v16, %v235_v14 }
  0x1c   :  { %787 = vmatprep.subr.bf16.mxu0 %v846_v3 }
  0x1e   :  { %743 = vmatmul.mubr.msk.f32.vlgmr.msra.gmra.mrb[2].mxu0 %vm97_vm1, %v62_v13  ;;  %v234_v13 = vld [vmem:[%s1149_s9 + $0x8] sm:$0xff] }
  0x1f   :  { %753 = vmatprep.mubr.msk.f32.mxu0 %vm847_vm0, %v848_v8  ;;  %789 = vmatpush3.bf16.msra.mxu0 %v788_v20  ;;  %v776_v20 = vpack.c.bf16 %v238_v19, %v237_v18 }
  0x20   :  { %790 = vmatprep.subr.bf16.mxu0 %v846_v3 }
  0x23   :  { %792 = vmatpush3.bf16.msra.mxu0 %v791_v23 }
  0x80   :  { %v69_v24 = vpop.permute.xlu0 %68 }
  0x81   :  { %v71_v25 = vadd.f32 %v69_v24, %v66_v5  ;;  %v779_v24 = vpack.c.bf16 %v240_v22, %v239_v21 }
  0x83   :  { %812 = vrsqrt.f32 %v71_v25  ;;  %vm73_vm2 = vcmp.gt.f32.partialorder %v71_v25, 0.0 }
  0x8d   :  { %v813_v27 = vpop.eup %812 }
  0x8e   :  { %78 = vrot.lane.b32.xlu0 %v813_v27, %s852_s29  ;;  %v74_v28 = vmul.f32 %v813_v27, %v71_v25  ;;  %v76_v30 = vmul.f32 %v813_v27, %v966_v2 }
  0x90   :  { %v75_v29 = vsel %vm73_vm2, %v74_v28, 0.0 }
  0x91   :  { %89 = vperm.xlu1 %807, %v75_v29  }
  0x95   :  { %173 = vperm.xlu1 %807, %v76_v30  }
  0xe9   :  { %v167_v31 = vpop.f32.mrb[0].mxu0 }
  0xea   :  { %v714_v32 = vpop.f32.mrb[1].mxu0 }
  0xf1   :  { %v416_v34 = vpop.f32.mrb[2].mxu0 }
  0xf2   :  { %v417_v35 = vadd.f32 %v671_v33, %v416_v34  ;;  %v744_v36 = vpop.f32.mrb[3].mxu0  ;;  %v667_v34 = vld [vmem:[%s1147_s7] ss:$0 sm:$0xff] }
  0xf4   :  { %v420_v37 = vmax.f32 %v417_v35, 0.0 }
  0xf6   :  { %754 = vmatmul.mubr.msk.f32.vlgmr.msra.gmra.mrb[4].mxu0 %vm97_vm1, %v420_v37 }
 0x100   :  { %v79_v38 = vpop.permute.xlu0 %78 }
 0x101   :  { %v81_v39 = vmul.f32 %v79_v38, %v966_v2 }
 0x103   :  { %184 = vperm.xlu0 %808, %v81_v39  }
 0x107   :  { %809 = vset.pattern.permute.xlu0 %v850_v12  ;;  %v233_v12 = vld [vmem:[%s1149_s9] sm:$0xff] }
 0x108   :  { %v770_v15 = vpack.c.bf16 %v234_v13, %v233_v12 }
 0x10a   :  { %771 = vmatpush3.bf16.msra.mxu1 %v770_v15  ;;  %v676_v15 = vld [vmem:[%s1157_s17] ss:$0 sm:$0xff] }
 0x10b   :  { %772 = vmatprep.subr.bf16.mxu1 %v846_v3 }
 0x10e   :  { %774 = vmatpush3.bf16.msra.mxu1 %v773_v17 }
 0x10f   :  { %775 = vmatprep.subr.bf16.mxu1 %v846_v3 }
 0x110   :  { %v90_v44 = vpop.permute.xlu1 %89 }
 0x111   :  { %v96_v50 = vmul.f32 %v95_v46, %v90_v44  ;;  %v518_v44 = vld [vmem:[%s1155_s15 + $0x8] sm:$0xff]  ;;  %s854_s15 = smov 112  }
 0x112   :  { %777 = vmatpush3.bf16.msra.mxu1 %v776_v20  ;;  %v794_v46 = vpack.c.bf16 %v518_v44, %v517_v43 }
 0x113   :  { %v168_v53 = vadd.f32 %v167_v31, %v96_v50  ;;  %778 = vmatprep.subr.bf16.mxu1 %v846_v3 }
 0x114   :  { %v174_v49 = vpop.permute.xlu1 %173 }
 0x115   :  { %v180_v51 = vmul.f32 %v179_v47, %v174_v49  ;;  %v669_v47 = vld [vmem:[%s1150_s10] ss:$0 sm:$0xff]  ;;  %s855_s10 = smov 126  }
 0x116   :  { %780 = vmatpush3.bf16.msra.mxu1 %v779_v24 }
 0x117   :  { %v181_v55 = vadd.f32 %v180_v51, %v168_v53  ;;  %793 = vmatprep.subr.bf16.mxu1 %v846_v3  ;;  %v668_v3 = vld [vmem:[%s1148_s8] ss:$0 sm:$0xff] }
 0x182   :  { %v185_v54 = vpop.permute.xlu0 %184 }
 0x183   :  { %v191_v56 = vmul.f32 %v190_v52, %v185_v54 }
 0x185   :  { %v192_v58 = vadd.f32 %v191_v56, %v181_v55 }
 0x187   :  { %v200_v59 = vadd.f32 %v666_v57, %v192_v58 }
 0x189   :  { %v202_v60 = vsel %vm201_vm3, %v200_v59, 0.0 }
 0x18a   :  { %203 = vadd.xlane.f32.xlu1 %v202_v60 }
 0x19b   :  { %330 = vrot.lane.b32.xlu1 %v65_v61, %s853_s2 }
 0x1c9   :  { %v501_v0 = vpop.f32.mrb[4].mxu0 }
 0x1ca   :  { %v1056_v1 = vadd.f32 %v673_v62, %v501_v0  ;;  %v755_v2 = vpop.f32.mrb[5].mxu0 }
 0x1cb   :  { %v516_v2 = vld [vmem:[%s1156_s16] sm:$0x7] }
 0x1cc   :  { %v505_v4 = vsub.f32 %v64_v63, %v1056_v1 }
 0x1ce   :  { %v506_v5 = vmul.f32 %v505_v4, %v505_v4 }
 0x1d0   :  { %508 = vrot.lane.b32.xlu1 %v506_v5, %s849_s26  ;;  %s653_s26 = sshll.u32 %s856_s13, 4  ;;  %s654_s26 = int_to_ptr.vmem [resolvable:$true] %s653_s26 }
 0x1d1   :  { %s822_s0 = scalar_lea.vmem %s654_s26, 128  ;;  %p827_p1 = scmp.lt.s32.totalorder %s654_s26, %s654_s26 }
 0x1d2   :  { %p823_p0 = scmp.ne.s32.totalorder %s654_s26, %s822_s0  ;;  %p828_p2 = scmp.lt.s32.totalorder %s822_s0, %s822_s0 }
 0x1d4   :  { %p829_p3 = por %p828_p2, %p827_p1 }
 0x1d6   :  { %p830_p4 = pnand %p829_p3, %p823_p0 }
 0x217   :  { %v204_v6 = vpop.xlane.xlu1 %203 }
 0x218   :  { %v206_v7 = vmul.f32 0.015625, %v204_v6 }
 0x21a   :  { %v207_v9 = vsub.f32 %v200_v59, %v206_v7 }
 0x21b   :  { %v331_v23 = vpop.permute.xlu1 %330 }
 0x21c   :  { %v208_v10 = vmul.f32 %v207_v9, %v207_v9 }
 0x21e   :  { %v209_v11 = vsel %vm201_vm3, %v208_v10, 0.0 }
 0x21f   :  { %210 = vadd.xlane.f32.xlu0 %v209_v11 }
 0x242   :  { %v509_v25 = vpop.permute.xlu1 %508 }
 0x243   :  { %v511_v27 = vadd.f32 %v509_v25, %v506_v5  ;;  %v628_v5 = vrot.slane %v516_v2, %v189_v48 }
 0x245   :  { %814 = vrsqrt.f32 %v511_v27  ;;  %vm513_vm5 = vcmp.gt.f32.partialorder %v511_v27, 0.0 }
 0x24f   :  { %v815_v28 = vpop.eup %814 }
 0x250   :  { %616 = vrot.lane.b32.xlu1 %v815_v28, %s852_s29  ;;  %v603_v29 = vmul.f32 %v815_v28, %v505_v4  ;;  %v514_v59 = vmul.f32 %v815_v28, %v511_v27 }
 0x252   :  { %v515_v60 = vsel %vm513_vm5, %v514_v59, 0.0 }
 0x254   :  { %606 = vperm.xlu1 %807, %v603_v29  }
 0x258   :  { %810 = vset.pattern.permute.xlu1 %v851_v26 }
 0x2ac   :  { %v211_v30 = vpop.xlane.xlu0 %210 }
 0x2ad   :  { %v212_v31 = vmul.f32 0.015625, %v211_v30 }
 0x2af   :  { %v213_v32 = vadd.f32 1e-05, %v212_v31 }
 0x2b1   :  { %816 = vrsqrt.f32 %v213_v32 }
 0x2bb   :  { %v817_v33 = vpop.eup %816 }
 0x2bc   :  { %v215_v35 = vmul.f32 %v817_v33, %v207_v9 }
 0x2be   :  { %v223_v36 = vmul.f32 %v667_v34, %v215_v35 }
 0x2c0   :  { %v231_v37 = vadd.f32 %v668_v3, %v223_v36 }
 0x2c2   :  { %v617_v38 = vpop.permute.xlu1 %616  ;;  %v232_v39 = vmax.f32 %v231_v37, 0.0 }
 0x2c3   :  { %v619_v40 = vmul.f32 %v617_v38, %v505_v4  ;;  %v612_v4 = vrot.slane %v516_v2, %v178_v45 }
 0x2c4   :  { %732 = vmatmul.mubr.msk.f32.vlgmr.msra.gmra.mrb[0].mxu1 %vm201_vm3, %v232_v39 }
 0x2c5   :  { %622 = vperm.xlu1 %810, %v619_v40   ;;  %760 = vmatprep.mubr.msk.f32.mxu1 %vm847_vm0, %v848_v8 }
 0x2c6   :  { %795 = vmatpush3.bf16.msra.mxu1 %v794_v46 }
 0x397   :  { %v317_v49 = vpop.f32.mrb[0].mxu1 }
 0x398   :  { %v318_v50 = vadd.f32 %v669_v47, %v317_v49  ;;  %v733_v51 = vpop.f32.mrb[1].mxu1 }
 0x39a   :  { %v322_v52 = vmin.f32 %v318_v50, 20.0  ;;  %vm321_vm4 = vcmp.gt.f32.partialorder %v318_v50, 20.0 }
 0x39c   :  { %v323_v53 = vmul.f32 1.442695, %v322_v52 }
 0x39e   :  { %818 = vpow2.f32 %v323_v53 }
 0x3a8   :  { %v819_v8 = vpop.eup %818 }
 0x3a9   :  { %v325_v54 = vadd.f32 1.0, %v819_v8 }
 0x3ab   :  { %820 = vlog2.f32 %v325_v54 }
 0x3b5   :  { %v821_v55 = vpop.eup %820 }
 0x3b6   :  { %v327_v56 = vmul.f32 0.6931472, %v821_v55 }
 0x3b8   :  { %v328_v57 = vsel %vm321_vm4, %v318_v50, %v327_v56 }
 0x3b9   :  { %v333_v58 = vmul.f32 %v331_v23, %v328_v57 }
 0x3bb   :  { %335 = vrot.lane.b32.xlu0 %v333_v58, %s854_s15 }
 0x3bf   :  { %521 = vperm.xlu0 %809, %v515_v60  }
 0x3c3   :  { %642 = vrot.lane.b32.xlu0 %v1056_v1, %s855_s10  ;;  %v527_v1 = vrot.slane %v516_v2, %v94_v42 }
 0x3c4   :  { %811 = vset.pattern.permute.xlu0 %v851_v26  ;;  %v607_v26 = vpop.permute.xlu1 %606 }
 0x3c5   :  { %v613_v10 = vmul.f32 %v612_v4, %v607_v26 }
 0x3c8   :  { %v623_v7 = vpop.permute.xlu1 %622 }
 0x3c9   :  { %v629_v13 = vmul.f32 %v628_v5, %v623_v7 }
 0x42d   :  { %v336_v61 = vpop.permute.xlu0 %335 }
 0x42e   :  { %v338_v62 = vadd.f32 %v336_v61, %v318_v50 }
 0x430   :  { %761 = vmatmul.mubr.msk.f32.vlgmr.msra.gmra.mrb[2].mxu1 %vm529_vm6, %v338_v62 }
 0x43e   :  { %v522_v63 = vpop.permute.xlu0 %521 }
 0x43f   :  { %v528_v6 = vmul.f32 %v527_v1, %v522_v63 }
 0x442   :  { %v643_v0 = vpop.permute.xlu0 %642 }
 0x443   :  { %646 = vst.msk [vmem:[%s1159_s19] sm:$0xff] %vm645_vm7, %v643_v0 }
 0x503   :  { %v599_v9 = vpop.f32.mrb[2].mxu1 }
 0x504   :  { %v600_v11 = vadd.f32 %v599_v9, %v528_v6  ;;  %v762_v12 = vpop.f32.mrb[3].mxu1 }
 0x506   :  { %v614_v14 = vadd.f32 %v613_v10, %v600_v11 }
 0x508   :  { %v630_v42 = vadd.f32 %v629_v13, %v614_v14 }
 0x50a   :  { %v638_v16 = vadd.f32 %v676_v15, %v630_v42 }
 0x50c   :  { %v639_v45 = vmax.f32 %v638_v16, 0.0 }
 0x50e   :  { %640 = vst.msk [vmem:[#allocation2] sm:$0xff] %vm529_vm6, %v639_v45 }
 0x50f   :  { %833 = shalt.err (!%p830_p4)
}
 0x510   :  { %s834_s5 = scalar_lea.hbm %s1158_s18, 128 }
 0x511   :  { %p835_p5 = scmp.ne.s32.totalorder %s1158_s18, %s834_s5  ;;  %p838_p6 = scmp.lt.u32.totalorder %s834_s5, %s1158_s18 }
 0x513   :  { %p840_p7 = pnand %p838_p6, %p835_p5 }
 0x515   :  { %843 = shalt.err (!%p840_p7)
}
 0x516   :  { %656 = dma.vmem_to_hbm [thread:$0]  %s654_s26, 128, %s1158_s18, [#allocation3]  }
 0x517   :  { %844 = dma.done.wait [#allocation3], 128  }
 0x518   :  { %845 = vsyncadd [#allocation3], 4294967168 }
 0x519   :  { %664 = vsyncpa [#allocation3], 1 }

</bundles_post_ra>
